<compile_context>
chip_gen: v6e
topology: v6e:2x2x1
jax: 0.10.0
libtpu: 0.0.40
codegen_flags: <defaults>
</compile_context>

<pallas_src>
import jax
import jax.numpy as jnp
from jax import lax
from jax.experimental import pallas as pl
from jax.experimental.pallas import tpu as pltpu


def _round_up(x, m):
    return (x + m - 1) // m * m


def _resblock_kernel(x_ref, w1_ref, b1_ref, w2_ref, b2_ref, o_ref):
    # x tile: (TM, H) f32; w1/w2: (H, H) bf16 in PyTorch (out, in) layout;
    # b1/b2: (1, H) f32.
    x = x_ref[...]
    x_bf = x.astype(jnp.bfloat16)

    # Linear 1 + bias + ReLU: relu(x @ W1.T + b1). Contract x's last dim against
    # W1's last dim (trans_b) so no transposed weight copy is ever materialized.
    h = lax.dot_general(
        x_bf, w1_ref[...],
        dimension_numbers=(((1,), (1,)), ((), ())),
        preferred_element_type=jnp.float32)
    h = jnp.maximum(h + b1_ref[...], 0.0)

    # Linear 2: h @ W2.T (bf16 MXU operands, f32 accumulation).
    y = lax.dot_general(
        h.astype(jnp.bfloat16), w2_ref[...],
        dimension_numbers=(((1,), (1,)), ((), ())),
        preferred_element_type=jnp.float32)

    # Bias + residual fused into the epilogue, all f32 on the VPU.
    o_ref[...] = (x.astype(jnp.float32) + y + b2_ref[...]).astype(o_ref.dtype)


def residual_block(x, w1, b1, w2, b2, *, block_m=256):
    """out = x + relu(x @ W1.T + b1) @ W2.T + b2  (PyTorch Linear convention).
    x: [B, H]; w1, w2: [H, H] in (out, in) layout; b1, b2: [H]."""
    B, H = x.shape
    out_dtype = x.dtype

    # Pad to TPU-friendly shapes: H to a lane multiple (128), B to the batch tile.
    H_pad = _round_up(H, 128)
    TM = min(block_m, _round_up(B, 8))
    B_pad = _round_up(B, TM)

    x_p = x
    if (B_pad, H_pad) != (B, H):
        x_p = jnp.pad(x, ((0, B_pad - B), (0, H_pad - H)))

    def pad_w(w):
        w = w.astype(jnp.bfloat16)  # bf16 resident weights / MXU operands
        if H_pad != H:
            w = jnp.pad(w, ((0, H_pad - H), (0, H_pad - H)))
        return w

    def pad_b(b):
        b = b.astype(jnp.float32)
        if H_pad != H:
            b = jnp.pad(b, (0, H_pad - H))
        return b.reshape(1, H_pad)

    w1_p, w2_p = pad_w(w1), pad_w(w2)
    b1_p, b2_p = pad_b(b1), pad_b(b2)

    grid = (B_pad // TM,)

    x_spec = pl.BlockSpec((TM, H_pad), lambda i: (i, 0))
    w_spec = pl.BlockSpec((H_pad, H_pad), lambda i: (0, 0))  # VMEM-resident
    b_spec = pl.BlockSpec((1, H_pad), lambda i: (0, 0))
    o_spec = pl.BlockSpec((TM, H_pad), lambda i: (i, 0))

    # Rough VMEM budget (double-buffered blocks) -> explicit scoped limit so
    # larger H still compiles within 64 MiB-VMEM parts (v7x).
    x_bytes = x_p.dtype.itemsize
    vmem_bytes = (
        2 * 2 * TM * H_pad * x_bytes      # x + out tiles, 2 buffers each
        + 2 * 2 * H_pad * H_pad * 2       # two bf16 weights, 2 buffers each
        + 4 * H_pad * 4                   # biases
        + (1 << 20)                       # slack
    )
    vmem_limit = int(min(max(vmem_bytes, 16 << 20), 64 << 20))

    cost = pl.CostEstimate(
        flops=4 * B_pad * H_pad * H_pad,
        transcendentals=0,
        bytes_accessed=(2 * B_pad * H_pad * x_bytes   # x in + out
                        + 2 * H_pad * H_pad * 2       # bf16 weights
                        + 2 * H_pad * 4))             # biases

    out = pl.pallas_call(
        _resblock_kernel,
        out_shape=jax.ShapeDtypeStruct((B_pad, H_pad), out_dtype),
        grid_spec=pltpu.PrefetchScalarGridSpec(
            num_scalar_prefetch=0,
            grid=grid,
            in_specs=[x_spec, w_spec, b_spec, w_spec, b_spec],
            out_specs=o_spec,
        ),
        compiler_params=pltpu.CompilerParams(
            dimension_semantics=("parallel",),
            vmem_limit_bytes=vmem_limit),
        cost_estimate=cost,
    )(x_p, w1_p, b1_p, w2_p, b2_p)

    if (B_pad, H_pad) != (B, H):
        out = out[:B, :H]
    return out


def init_params(key, hidden_size, dtype=jnp.float32):
    """Matches nn.init.kaiming_normal_(mode='fan_in', nonlinearity='relu'):
    std = sqrt(2 / fan_in), fan_in = hidden_size; biases zeroed."""
    k1, k2 = jax.random.split(key)
    std = (2.0 / hidden_size) ** 0.5
    w1 = jax.random.normal(k1, (hidden_size, hidden_size), dtype) * std
    w2 = jax.random.normal(k2, (hidden_size, hidden_size), dtype) * std
    b1 = jnp.zeros((hidden_size,), dtype)
    b2 = jnp.zeros((hidden_size,), dtype)
    return w1, b1, w2, b2


def residual_block_ref(x, w1, b1, w2, b2):
    h = jnp.maximum(x @ w1.T + b1, 0.0)
    return x + (h @ w2.T + b2)


if __name__ == "__main__":
    key = jax.random.PRNGKey(0)

    # Case 1: small, unaligned shapes straight from the module spec (padded inside).
    batch, hidden = 8, 32
    kx, kp, key = jax.random.split(key, 3)
    x = jax.random.normal(kx, (batch, hidden), jnp.float32)
    params = init_params(kp, hidden)
    out = jax.block_until_ready(residual_block(x, *params))
    ref = residual_block_ref(x, *params)
    assert out.shape == (batch, hidden)
    # bf16 MXU operands -> loosened tolerance vs f32 reference.
    assert jnp.allclose(out, ref, atol=5e-2, rtol=5e-2), "mismatch (small case)"

    # Case 2: aligned shapes exercising the batch-tiled (grid > 1) pipelined path.
    batch2, hidden2 = 512, 256
    kx2, kp2 = jax.random.split(key)
    x2 = jax.random.normal(kx2, (batch2, hidden2), jnp.float32)
    params2 = init_params(kp2, hidden2)
    out2 = jax.block_until_ready(residual_block(x2, *params2))
    ref2 = residual_block_ref(x2, *params2)
    assert out2.shape == (batch2, hidden2)
    assert jnp.allclose(out2, ref2, atol=5e-2, rtol=5e-2), "mismatch (tiled case)"

    print("KERNEL_OK")
</pallas_src>

<mosaic_0001>
module attributes {stable_mosaic.version = 11 : i64} {
  func.func @_resblock_kernel(%arg0: i32, %arg1: memref<8x128xf32, #tpu.memory_space<vmem>>, %arg2: memref<128x128xbf16, #tpu.memory_space<vmem>>, %arg3: memref<1x128xf32, #tpu.memory_space<vmem>>, %arg4: memref<128x128xbf16, #tpu.memory_space<vmem>>, %arg5: memref<1x128xf32, #tpu.memory_space<vmem>>, %arg6: memref<8x128xf32, #tpu.memory_space<vmem>>) attributes {dimension_semantics = [#tpu.dimension_semantics<parallel>], iteration_bounds = array<i64: 1>, scalar_prefetch = 0 : i64, scratch_operands = 0 : i64, tpu.core_type = #tpu.core_type<tc>, window_params = [{transform_indices = @transform_0, window_bounds = array<i64: 8, 128>}, {pipeline_mode = #tpu.pipeline_mode<synchronous>, transform_indices = @transform_1, window_bounds = array<i64: 128, 128>}, {pipeline_mode = #tpu.pipeline_mode<synchronous>, transform_indices = @transform_2, window_bounds = array<i64: 1, 128>}, {pipeline_mode = #tpu.pipeline_mode<synchronous>, transform_indices = @transform_3, window_bounds = array<i64: 128, 128>}, {pipeline_mode = #tpu.pipeline_mode<synchronous>, transform_indices = @transform_4, window_bounds = array<i64: 1, 128>}, {transform_indices = @transform_5, window_bounds = array<i64: 8, 128>}]} {
    %c0 = arith.constant 0 : index
    %c0_0 = arith.constant 0 : index
    %0 = vector.load %arg1[%c0, %c0_0] : memref<8x128xf32, #tpu.memory_space<vmem>>, vector<8x128xf32>
    %1 = arith.truncf %0 : vector<8x128xf32> to vector<8x128xbf16>
    %c0_1 = arith.constant 0 : index
    %c0_2 = arith.constant 0 : index
    %2 = vector.load %arg2[%c0_1, %c0_2] : memref<128x128xbf16, #tpu.memory_space<vmem>>, vector<128x128xbf16>
    %cst = arith.constant dense<0.000000e+00> : vector<8x128xf32>
    %3 = tpu.matmul %1, %2, %cst {dimension_numbers = #tpu.dot_dimension_numbers<[1], [1], [0], [0], [0, 0, 1, 0], [], []>} : vector<8x128xbf16>, vector<128x128xbf16>, vector<8x128xf32> -> vector<8x128xf32>
    %c0_3 = arith.constant 0 : index
    %c0_4 = arith.constant 0 : index
    %4 = vector.load %arg3[%c0_3, %c0_4] : memref<1x128xf32, #tpu.memory_space<vmem>>, vector<1x128xf32>
    %5 = vector.broadcast %4 : vector<1x128xf32> to vector<8x128xf32>
    %6 = arith.addf %3, %5 : vector<8x128xf32>
    %cst_5 = arith.constant 0.000000e+00 : f32
    %7 = vector.broadcast %cst_5 : f32 to vector<8x128xf32>
    %8 = arith.maximumf %6, %7 : vector<8x128xf32>
    %9 = arith.truncf %8 : vector<8x128xf32> to vector<8x128xbf16>
    %c0_6 = arith.constant 0 : index
    %c0_7 = arith.constant 0 : index
    %10 = vector.load %arg4[%c0_6, %c0_7] : memref<128x128xbf16, #tpu.memory_space<vmem>>, vector<128x128xbf16>
    %cst_8 = arith.constant dense<0.000000e+00> : vector<8x128xf32>
    %11 = tpu.matmul %9, %10, %cst_8 {dimension_numbers = #tpu.dot_dimension_numbers<[1], [1], [0], [0], [0, 0, 1, 0], [], []>} : vector<8x128xbf16>, vector<128x128xbf16>, vector<8x128xf32> -> vector<8x128xf32>
    %12 = arith.addf %0, %11 : vector<8x128xf32>
    %c0_9 = arith.constant 0 : index
    %c0_10 = arith.constant 0 : index
    %13 = vector.load %arg5[%c0_9, %c0_10] : memref<1x128xf32, #tpu.memory_space<vmem>>, vector<1x128xf32>
    %14 = vector.broadcast %13 : vector<1x128xf32> to vector<8x128xf32>
    %15 = arith.addf %12, %14 : vector<8x128xf32>
    %c0_11 = arith.constant 0 : index
    %c0_12 = arith.constant 0 : index
    %16 = vector.load %arg6[%c0_11, %c0_12] : memref<8x128xf32, #tpu.memory_space<vmem>>, vector<8x128xf32>
    tpu.vector_store %arg6[%c0_11, %c0_12], %15 {strides = array<i32>} : memref<8x128xf32, #tpu.memory_space<vmem>>, vector<8x128xf32>,
    return
  }
  func.func @transform_0(%arg0: i32) -> (i32, i32) {
    %c0_i32 = arith.constant 0 : i32
    %c0_i32_0 = arith.constant 0 : i32
    return %arg0, %c0_i32 : i32, i32
  }
  func.func @transform_1(%arg0: i32) -> (i32, i32) {
    %c0_i32 = arith.constant 0 : i32
    %c0_i32_0 = arith.constant 0 : i32
    %c0_i32_1 = arith.constant 0 : i32
    return %c0_i32, %c0_i32_0 : i32, i32
  }
  func.func @transform_2(%arg0: i32) -> (i32, i32) {
    %c0_i32 = arith.constant 0 : i32
    %c0_i32_0 = arith.constant 0 : i32
    %c0_i32_1 = arith.constant 0 : i32
    return %c0_i32, %c0_i32_0 : i32, i32
  }
  func.func @transform_3(%arg0: i32) -> (i32, i32) {
    %c0_i32 = arith.constant 0 : i32
    %c0_i32_0 = arith.constant 0 : i32
    %c0_i32_1 = arith.constant 0 : i32
    return %c0_i32, %c0_i32_0 : i32, i32
  }
  func.func @transform_4(%arg0: i32) -> (i32, i32) {
    %c0_i32 = arith.constant 0 : i32
    %c0_i32_0 = arith.constant 0 : i32
    %c0_i32_1 = arith.constant 0 : i32
    return %c0_i32, %c0_i32_0 : i32, i32
  }
  func.func @transform_5(%arg0: i32) -> (i32, i32) {
    %c0_i32 = arith.constant 0 : i32
    %c0_i32_0 = arith.constant 0 : i32
    return %arg0, %c0_i32 : i32, i32
  }
}

</mosaic_0001>

<bundles_post_ra>
// kernel: tpu_custom_call.1
= control target key start
LH: loop header
LB: loop body
LE: loop exit
PB: predicated region body
PF: predicated region fallthrough
CT: control target
= control target key end

     0   :  { %10 = vsyncpa [#allocation3], 0  ;;  %s548_s0 = inlined_call_operand.hbm [shape: f32[8,128], index: 0, kind: input, shape index: {}]   ;;  %s549_s1 = inlined_call_operand.hbm [shape: bf16[128,128], index: 1, kind: input, shape index: {}]   ;;  %s550_s2 = inlined_call_operand.vmem [shape: f32[1,128], index: 2, kind: input, shape index: {}]   ;;  %s551_s3 = inlined_call_operand.hbm [shape: bf16[128,128], index: 3, kind: input, shape index: {}]   ;;  %s552_s4 = inlined_call_operand.vmem [shape: f32[1,128], index: 4, kind: input, shape index: {}]   ;;  %s553_s5 = inlined_call_operand.hbm [shape: f32[8,128], index: 5, kind: output, shape index: {}]  }
   0x1   :  { %11 = vsyncpa [#allocation6], 0 }
   0x2   :  { %12 = vsyncpa [#allocation4], 0  ;;  %s492_s18 = smov [#allocation5]  }
   0x3   :  { %s28_s19 = sshll.u32 %s492_s18, 4  ;;  %s29_s19 = int_to_ptr.vmem [resolvable:$true] %s28_s19 }
   0x4   :  { %s414_s20 = scalar_lea.vmem %s29_s19, 1024  ;;  %p419_p1 = scmp.lt.s32.totalorder %s29_s19, %s29_s19 }
   0x5   :  { %p415_p0 = scmp.ne.s32.totalorder %s29_s19, %s414_s20  ;;  %p420_p2 = scmp.lt.s32.totalorder %s414_s20, %s414_s20 }
   0x7   :  { %p421_p3 = por %p420_p2, %p419_p1 }
   0x9   :  { %p422_p4 = pnand %p421_p3, %p415_p0 }
   0xb   :  { %425 = shalt.err (!%p422_p4)
}
   0xc   :  { %s493_s21 = smov 64   ;;  %s494_s22 = smov 4  }
   0xd   :  { %34 = dma.hbm_to_vmem [thread:$0]  %s549_s1, 1024, %s29_s19, [#allocation6], %s493_s21, %s493_s21, %s494_s22  }
   0xe   :  { %s495_s25 = smov [#allocation2]   ;;  %s496_s27 = smov [#allocation7]  }
   0xf   :  { %s19_s26 = sshll.u32 %s495_s25, 4  ;;  %s42_s28 = sshll.u32 %s496_s27, 4  ;;  %s20_s26 = int_to_ptr.vmem [resolvable:$true] %s19_s26  ;;  %s43_s28 = int_to_ptr.vmem [resolvable:$true] %s42_s28 }
  0x10   :  { %s434_s29 = scalar_lea.vmem %s20_s26, 128  ;;  %p439_p6 = scmp.lt.s32.totalorder %s20_s26, %s20_s26 }
  0x11   :  { %p435_p5 = scmp.ne.s32.totalorder %s20_s26, %s434_s29  ;;  %p440_p7 = scmp.lt.s32.totalorder %s434_s29, %s434_s29 }
  0x13   :  { %p441_p8 = por %p440_p7, %p439_p6 }
  0x15   :  { %p442_p9 = pnand %p441_p8, %p435_p5 }
  0x17   :  { %445 = shalt.err (!%p442_p9)
}
  0x18   :  { %22 = dma.hbm_to_vmem [thread:$0]  %s548_s0, 128, %s20_s26, [#allocation3]  }
  0x19   :  { %s454_s7 = scalar_lea.vmem %s43_s28, 1024  ;;  %p459_p11 = scmp.lt.s32.totalorder %s43_s28, %s43_s28 }
  0x1a   :  { %p455_p10 = scmp.ne.s32.totalorder %s43_s28, %s454_s7  ;;  %p460_p12 = scmp.lt.s32.totalorder %s454_s7, %s454_s7 }
  0x1c   :  { %p461_p13 = por %p460_p12, %p459_p11 }
  0x1e   :  { %p462_p0 = pnand %p461_p13, %p455_p10 }
  0x20   :  { %465 = shalt.err (!%p462_p0)
}
  0x21   :  { %48 = dma.hbm_to_vmem [thread:$0]  %s551_s3, 1024, %s43_s28, [#allocation6], %s493_s21, %s493_s21, %s494_s22  }
  0x22   :  { %486 = dma.done.wait [#allocation3], 128  }
  0x23   :  { %487 = vsyncadd [#allocation3], 4294967168 }
  0x24   :  { %488 = dma.done.wait [#allocation6], 2048  }
  0x25   :  { %489 = vsyncadd [#allocation6], 4294965248  ;;  %v497_v0 = vmov 0.0   ;;  %vm498_vm0 = vmmov 0   ;;  %v390_v1 = vld [vmem:[#allocation5 + $0x38] sm:$0xff]   ;;  %v391_v2 = vld [vmem:[#allocation5 + $0x30] sm:$0xff]  }
  0x26   :  { %342 = vmatprep.subr.bf16.mxu0 %v497_v0  ;;  %358 = vmatprep.mubr.msk.bf16.mxu0 %vm498_vm0, %v497_v0  ;;  %v398_v3 = vld [vmem:[#allocation7 + $0x38] sm:$0xff]   ;;  %v392_v4 = vld [vmem:[#allocation5 + $0x28] sm:$0xff]   ;;  %v399_v5 = vld [vmem:[#allocation7 + $0x30] sm:$0xff]   ;;  %s499_s11 = smov [#allocation8]  }
  0x27   :  { %362 = vmatprep.subr.bf16.mxu1 %v497_v0  ;;  %378 = vmatprep.mubr.msk.bf16.mxu1 %vm498_vm0, %v497_v0  ;;  %v393_v6 = vld [vmem:[#allocation5 + $0x20] sm:$0xff]   ;;  %v400_v7 = vld [vmem:[#allocation7 + $0x28] sm:$0xff]   ;;  %v394_v8 = vld [vmem:[#allocation5 + $0x18] sm:$0xff]   ;;  %s296_s12 = sshll.u32 %s499_s11, 4  ;;  %s297_s12 = int_to_ptr.vmem [resolvable:$true] %s296_s12 }
  0x28   :  { %343 = vmatpush3.bf16.xpose.msra.mxu0 %v390_v1  ;;  %363 = vmatpush3.bf16.xpose.msra.mxu1 %v398_v3  ;;  %v401_v9 = vld [vmem:[#allocation7 + $0x20] sm:$0xff]   ;;  %v395_v10 = vld [vmem:[#allocation5 + $0x10] sm:$0xff]   ;;  %v402_v11 = vld [vmem:[#allocation7 + $0x18] sm:$0xff]   ;;  %p471_p2 = scmp.lt.s32.totalorder %s297_s12, %s297_s12 }
  0x29   :  { %344 = vmatprep.subr.bf16.mxu0 %v497_v0  ;;  %364 = vmatprep.subr.bf16.mxu1 %v497_v0  ;;  %v396_v12 = vld [vmem:[#allocation5 + $0x8] sm:$0xff]   ;;  %v403_v13 = vld [vmem:[#allocation7 + $0x10] sm:$0xff]   ;;  %v397_v14 = vld [vmem:[#allocation5] sm:$0xff]  }
  0x2a   :  { %v404_v15 = vld [vmem:[#allocation7 + $0x8] sm:$0xff]   ;;  %v61_v16 = vld [vmem:[#allocation2] sm:$0xff]  ;;  %v405_v18 = vld [vmem:[#allocation7] sm:$0xff]  }
  0x2b   :  { %v62_v17 = vpack.c.bf16 %v61_v16, %v61_v16  ;;  %v306_v19 = vld [vmem:[%s550_s2] ss:$0 sm:$0xff]  ;;  %s466_s2 = scalar_lea.vmem %s297_s12, 128 }
  0x2c   :  { %v323_v28 = vld [vmem:[%s552_s4] ss:$0 sm:$0xff]  ;;  %p467_p1 = scmp.ne.s32.totalorder %s297_s12, %s466_s2  ;;  %p472_p3 = scmp.lt.s32.totalorder %s466_s2, %s466_s2 }
  0x2e   :  { %p473_p4 = por %p472_p3, %p471_p2 }
  0x30   :  { %345 = vmatpush3.bf16.xpose.msra.mxu0 %v391_v2  ;;  %365 = vmatpush3.bf16.xpose.msra.mxu1 %v399_v5  ;;  %p474_p5 = pnand %p473_p4, %p467_p1 }
  0x31   :  { %346 = vmatprep.subr.bf16.mxu0 %v497_v0  ;;  %366 = vmatprep.subr.bf16.mxu1 %v497_v0 }
  0x38   :  { %347 = vmatpush3.bf16.xpose.msra.mxu0 %v392_v4  ;;  %367 = vmatpush3.bf16.xpose.msra.mxu1 %v400_v7 }
  0x39   :  { %348 = vmatprep.subr.bf16.mxu0 %v497_v0  ;;  %368 = vmatprep.subr.bf16.mxu1 %v497_v0 }
  0x40   :  { %349 = vmatpush3.bf16.xpose.msra.mxu0 %v393_v6  ;;  %369 = vmatpush3.bf16.xpose.msra.mxu1 %v401_v9 }
  0x41   :  { %350 = vmatprep.subr.bf16.mxu0 %v497_v0  ;;  %370 = vmatprep.subr.bf16.mxu1 %v497_v0 }
  0x48   :  { %351 = vmatpush3.bf16.xpose.msra.mxu0 %v394_v8  ;;  %371 = vmatpush3.bf16.xpose.msra.mxu1 %v402_v11 }
  0x49   :  { %352 = vmatprep.subr.bf16.mxu0 %v497_v0  ;;  %372 = vmatprep.subr.bf16.mxu1 %v497_v0 }
  0x50   :  { %353 = vmatpush3.bf16.xpose.msra.mxu0 %v395_v10  ;;  %373 = vmatpush3.bf16.xpose.msra.mxu1 %v403_v13 }
  0x51   :  { %354 = vmatprep.subr.bf16.mxu0 %v497_v0  ;;  %374 = vmatprep.subr.bf16.mxu1 %v497_v0 }
  0x58   :  { %355 = vmatpush3.bf16.xpose.msra.mxu0 %v396_v12  ;;  %375 = vmatpush3.bf16.xpose.msra.mxu1 %v404_v15 }
  0x59   :  { %356 = vmatprep.subr.bf16.mxu0 %v497_v0  ;;  %376 = vmatprep.subr.bf16.mxu1 %v497_v0 }
  0x60   :  { %357 = vmatpush3.bf16.xpose.msra.mxu0 %v397_v14  ;;  %377 = vmatpush3.bf16.xpose.msra.mxu1 %v405_v18 }
  0x67   :  { %359 = vmatmul.mubr.bf16.vlgmr.msra.gmra.mxu0 %v62_v17 }
 0x127   :  { %v168_v20 = vpop.f32.mrf.mxu0 }
 0x128   :  { %v169_v21 = vadd.f32 %v306_v19, %v168_v20 }
 0x129   :  { %v360_v22 = vpop.f32.mrf.mxu0 }
 0x12a   :  { %v174_v23 = vmax.f32 %v169_v21, 0.0 }
 0x12b   :  { %v171_v24 = vpop.f32.mrf.mxu0 }
 0x12c   :  { %v175_v25 = vpack.c.bf16 %v174_v23, %v174_v23 }
 0x12d   :  { %v361_v26 = vpop.f32.mrf.mxu0 }
 0x12e   :  { %379 = vmatmul.mubr.bf16.vlgmr.msra.gmra.mxu1 %v175_v25 }
 0x1ee   :  { %v274_v27 = vpop.f32.mrf.mxu1 }
 0x1ef   :  { %v280_v29 = vadd.f32 %v274_v27, %v61_v16 }
 0x1f0   :  { %v380_v30 = vpop.f32.mrf.mxu1 }
 0x1f1   :  { %v288_v31 = vadd.f32 %v323_v28, %v280_v29 }
 0x1f2   :  { %v277_v32 = vpop.f32.mrf.mxu1 }
 0x1f3   :  { %289 = vst [vmem:[#allocation8] sm:$0xff] %v288_v31 }
 0x1f4   :  { %v381_v33 = vpop.f32.mrf.mxu1 }
 0x1f5   :  { %477 = shalt.err (!%p474_p5)
}
 0x1f6   :  { %299 = dma.vmem_to_hbm [thread:$0]  %s297_s12, 128, %s553_s5, [#allocation4]  }
 0x1f7   :  { %490 = dma.done.wait [#allocation4], 128  }
 0x1f8   :  { %491 = vsyncadd [#allocation4], 4294967168 }
 0x1f9   :  { %303 = vsyncpa [#allocation3], 1 }
 0x1fa   :  { %304 = vsyncpa [#allocation6], 1 }
 0x1fb   :  { %305 = vsyncpa [#allocation4], 1 }

</bundles_post_ra>
